<compile_context>
chip_gen: v6e
topology: v6e:2x2x1
jax: 0.10.0
libtpu: 0.0.40
codegen_flags: <defaults>
</compile_context>

<pallas_src>
import jax
import jax.numpy as jnp
from jax.experimental import pallas as pl
from jax.experimental.pallas import tpu as pltpu


def _round_down(a, b):
    return a // b * b


def _vmem_budget_bytes():
    """Generation-aware VMEM budget (~75% of physical), with a safe fallback."""
    try:
        info = pltpu.get_tpu_info()
        cap = getattr(info, "vmem_capacity_bytes", None)
        if cap:
            return int(cap) * 3 // 4          # v7x: ~48 MiB, v5e/v6e: ~96 MiB
    except Exception:
        pass
    return 48 * 1024 * 1024                   # conservative: fits v7x's 64 MiB


# --------------------------------- kernels ---------------------------------


def _resblock_resident_kernel(x_ref, wt_ref, b_ref, o_ref):
    """Weight fully VMEM-resident: fused dot + bias + SiLU + residual per tile.

    x_ref : [tm, H]   token tile
    wt_ref: [H, H]    pre-transposed weight (in, out), constant block index
    b_ref : [1, H]    bias
    o_ref : [tm, H]   output tile
    """
    x = x_ref[...]
    z = jnp.dot(x, wt_ref[...], preferred_element_type=jnp.float32)
    z = z + b_ref[...].astype(jnp.float32)
    act = z * jax.nn.sigmoid(z)                           # SiLU in f32 (EUP/VPU)
    o_ref[...] = (x.astype(jnp.float32) + act).astype(o_ref.dtype)


def _resblock_ktiled_kernel(x_ref, wt_ref, b_ref, o_ref, acc_ref):
    """Contraction-tiled path for weights too large to keep VMEM-resident.

    x_ref  : [tm, H]      token tile (block index invariant along k)
    wt_ref : [tk, H]      pre-transposed weight tile (in_k, out)
    b_ref  : [1, H]       bias
    o_ref  : [tm, H]      output tile (written only on the last k step)
    acc_ref: [tm, H] f32  accumulator scratch
    """
    k = pl.program_id(1)
    nk = pl.num_programs(1)
    tk = wt_ref.shape[0]

    @pl.when(k == 0)
    def _():
        acc_ref[...] = jnp.zeros_like(acc_ref)

    start = pl.multiple_of(k * tk, tk)
    x_k = x_ref[:, pl.ds(start, tk)]                      # [tm, tk]
    acc_ref[...] += jnp.dot(x_k, wt_ref[...],
                            preferred_element_type=jnp.float32)

    @pl.when(k == nk - 1)
    def _():
        z = acc_ref[...] + b_ref[...].astype(jnp.float32)
        act = z * jax.nn.sigmoid(z)
        o_ref[...] = (x_ref[...].astype(jnp.float32) + act).astype(o_ref.dtype)


# --------------------------------- wrapper ---------------------------------


def res_block(x, weight, bias, *, compute_dtype=None):
    """out = x + SiLU(x @ W.T + b).

    x: [..., H]; weight: [H, H] (PyTorch nn.Linear [out, in]); bias: [H].
    compute_dtype: optional (e.g. jnp.bfloat16) cast at the kernel boundary;
      accumulation is always f32 and the output keeps x.dtype.
    """
    orig_shape = x.shape
    out_dtype = x.dtype
    H = orig_shape[-1]
    assert weight.shape == (H, H) and bias.shape == (H,)

    M = 1
    for d in orig_shape[:-1]:
        M *= d
    x2d = x.reshape(M, H)

    # One-time HBM transpose so both kernel paths do a plain [tm,K] @ [K,H] dot
    # (no in-kernel weight transpose burning XLU/vex slots every step).
    w_t = weight.T                                         # [in, out]
    if compute_dtype is not None:
        x2d = x2d.astype(compute_dtype)
        w_t = w_t.astype(compute_dtype)

    x_isz = x2d.dtype.itemsize
    w_isz = w_t.dtype.itemsize
    o_isz = jnp.dtype(out_dtype).itemsize

    budget = _vmem_budget_bytes()

    # ---- layout choice: resident weight vs. contraction-tiled ----
    # (conservatively count 2 buffers for every pipelined input/output block)
    w_resident_bytes = 2 * H * H * w_isz
    min_xo_bytes = 2 * 8 * H * (x_isz + o_isz)
    resident = (w_resident_bytes + min_xo_bytes <= budget) or (H % 128 != 0)

    if resident:
        fixed = w_resident_bytes
        per_row = 2 * H * (x_isz + o_isz)
        tk = H
    else:
        # contraction tile: a multiple of 128 that divides H, modest size.
        tk = 128
        for cand in (512, 384, 256, 128):
            if H % cand == 0:
                tk = cand
                break
        fixed = 2 * tk * H * w_isz
        per_row = 2 * H * (x_isz + o_isz) + 4 * H          # + f32 accumulator

    # Largest token tile that fits the budget.
    tm = 8
    for cand in (1024, 768, 512, 384, 256, 128, 64, 32, 16, 8):
        if fixed + cand * per_row <= budget:
            tm = cand
            break

    # Keep >= 4 token tiles when there is enough work (megacore + pipeline),
    # never increasing tm beyond the budget-selected value.
    if M >= 1024:
        tm = min(tm, max(256, _round_down(M // 4, 8)))

    if M <= tm:
        tm_eff, grid_m = M, 1                              # single full-extent block
    else:
        tm_eff = tm                                        # multiple of 8
        grid_m = pl.cdiv(M, tm_eff)                        # ragged last block: masked stores

    needed = fixed + tm_eff * per_row + (2 << 20)
    vmem_limit = int(min(max(budget, needed), 128 * 1024 * 1024))

    b2d = bias.reshape(1, H)

    if resident:
        grid = (grid_m,)
        in_specs = [
            pl.BlockSpec((tm_eff, H), lambda i: (i, 0)),       # token tile
            pl.BlockSpec((H, H), lambda i: (0, 0)),            # resident weight
            pl.BlockSpec((1, H), lambda i: (0, 0)),            # bias
        ]
        out_specs = pl.BlockSpec((tm_eff, H), lambda i: (i, 0))
        scratch_shapes = []
        kernel = _resblock_resident_kernel
        dim_sem = ("parallel",)
        w_traffic = H * H * w_isz                              # fetched exactly once
    else:
        grid = (grid_m, H // tk)
        in_specs = [
            pl.BlockSpec((tm_eff, H), lambda i, k: (i, 0)),    # token tile (invariant in k)
            pl.BlockSpec((tk, H), lambda i, k: (k, 0)),        # weight tile along `in`
            pl.BlockSpec((1, H), lambda i, k: (0, 0)),         # bias
        ]
        out_specs = pl.BlockSpec((tm_eff, H), lambda i, k: (i, 0))
        scratch_shapes = [pltpu.VMEM((tm_eff, H), jnp.float32)]
        kernel = _resblock_ktiled_kernel
        dim_sem = ("parallel", "arbitrary")
        w_traffic = grid_m * H * H * w_isz                     # weight re-streamed per token tile

    cost = pl.CostEstimate(
        flops=2 * M * H * H + 4 * M * H,
        transcendentals=M * H,
        bytes_accessed=(M * H * x_isz + M * H * o_isz + w_traffic
                        + H * bias.dtype.itemsize),
    )

    out2d = pl.pallas_call(
        kernel,
        out_shape=jax.ShapeDtypeStruct((M, H), out_dtype),
        grid_spec=pltpu.PrefetchScalarGridSpec(
            num_scalar_prefetch=0,
            grid=grid,
            in_specs=in_specs,
            out_specs=out_specs,
            scratch_shapes=scratch_shapes,
        ),
        compiler_params=pltpu.CompilerParams(
            dimension_semantics=dim_sem,
            vmem_limit_bytes=vmem_limit,
        ),
        cost_estimate=cost,
    )(x2d, w_t, b2d)

    return out2d.reshape(orig_shape)


def _reference_res_block(x, weight, bias):
    z = jnp.einsum("...h,oh->...o", x, weight) + bias
    return x + jax.nn.silu(z)


if __name__ == "__main__":
    # Small config consistent with the module: batch=2, seq=8, hidden=32.
    B, S, H = 2, 8, 32
    key = jax.random.PRNGKey(0)
    kx, kw, kb = jax.random.split(key, 3)

    x = jax.random.normal(kx, (B, S, H), dtype=jnp.float32)
    # PyTorch nn.Linear layout: weight [out_features, in_features], bias [out].
    # (The module zero-inits the weight; nonzero weights are used here so the
    #  correctness check is meaningful — forward semantics are identical.)
    weight = jax.random.normal(kw, (H, H), dtype=jnp.float32) * 0.05
    bias = jax.random.normal(kb, (H,), dtype=jnp.float32) * 0.05

    out = res_block(x, weight, bias)
    out = jax.block_until_ready(out)

    ref = _reference_res_block(x, weight, bias)
    assert out.shape == x.shape
    assert jnp.allclose(out, ref, atol=1e-4, rtol=1e-4)

    print("KERNEL_OK")
</pallas_src>

<mosaic_0001>
module attributes {stable_mosaic.version = 11 : i64} {
  func.func @_resblock_resident_kernel(%arg0: i32, %arg1: memref<16x32xf32, #tpu.memory_space<vmem>>, %arg2: memref<32x32xf32, #tpu.memory_space<vmem>>, %arg3: memref<1x32xf32, #tpu.memory_space<vmem>>, %arg4: memref<16x32xf32, #tpu.memory_space<vmem>>) attributes {dimension_semantics = [#tpu.dimension_semantics<parallel>], iteration_bounds = array<i64: 1>, scalar_prefetch = 0 : i64, scratch_operands = 0 : i64, tpu.core_type = #tpu.core_type<tc>, window_params = [{transform_indices = @transform_0, window_bounds = array<i64: 16, 32>}, {pipeline_mode = #tpu.pipeline_mode<synchronous>, transform_indices = @transform_1, window_bounds = array<i64: 32, 32>}, {pipeline_mode = #tpu.pipeline_mode<synchronous>, transform_indices = @transform_2, window_bounds = array<i64: 1, 32>}, {transform_indices = @transform_3, window_bounds = array<i64: 16, 32>}]} {
    %c0 = arith.constant 0 : index
    %c0_0 = arith.constant 0 : index
    %0 = vector.load %arg1[%c0, %c0_0] : memref<16x32xf32, #tpu.memory_space<vmem>>, vector<16x32xf32>
    %c0_1 = arith.constant 0 : index
    %c0_2 = arith.constant 0 : index
    %1 = vector.load %arg2[%c0_1, %c0_2] : memref<32x32xf32, #tpu.memory_space<vmem>>, vector<32x32xf32>
    %cst = arith.constant dense<0.000000e+00> : vector<16x32xf32>
    %2 = tpu.matmul %0, %1, %cst {dimension_numbers = #tpu.dot_dimension_numbers<[1], [0], [0], [1], [0, 0, 1, 1], [], []>} : vector<16x32xf32>, vector<32x32xf32>, vector<16x32xf32> -> vector<16x32xf32>
    %c0_3 = arith.constant 0 : index
    %c0_4 = arith.constant 0 : index
    %3 = vector.load %arg3[%c0_3, %c0_4] : memref<1x32xf32, #tpu.memory_space<vmem>>, vector<1x32xf32>
    %4 = vector.broadcast %3 : vector<1x32xf32> to vector<16x32xf32>
    %5 = arith.addf %2, %4 : vector<16x32xf32>
    %6 = arith.negf %5 : vector<16x32xf32>
    %7 = math.exp %6 : vector<16x32xf32>
    %cst_5 = arith.constant 1.000000e+00 : f32
    %8 = vector.broadcast %cst_5 : f32 to vector<16x32xf32>
    %9 = arith.addf %8, %7 : vector<16x32xf32>
    %10 = arith.divf %8, %9 : vector<16x32xf32>
    %11 = arith.mulf %5, %10 : vector<16x32xf32>
    %12 = arith.addf %0, %11 : vector<16x32xf32>
    %c0_6 = arith.constant 0 : index
    %c0_7 = arith.constant 0 : index
    %13 = vector.load %arg4[%c0_6, %c0_7] : memref<16x32xf32, #tpu.memory_space<vmem>>, vector<16x32xf32>
    tpu.vector_store %arg4[%c0_6, %c0_7], %12 {strides = array<i32>} : memref<16x32xf32, #tpu.memory_space<vmem>>, vector<16x32xf32>,
    return
  }
  func.func @transform_0(%arg0: i32) -> (i32, i32) {
    %c0_i32 = arith.constant 0 : i32
    %c0_i32_0 = arith.constant 0 : i32
    return %arg0, %c0_i32 : i32, i32
  }
  func.func @transform_1(%arg0: i32) -> (i32, i32) {
    %c0_i32 = arith.constant 0 : i32
    %c0_i32_0 = arith.constant 0 : i32
    %c0_i32_1 = arith.constant 0 : i32
    return %c0_i32, %c0_i32_0 : i32, i32
  }
  func.func @transform_2(%arg0: i32) -> (i32, i32) {
    %c0_i32 = arith.constant 0 : i32
    %c0_i32_0 = arith.constant 0 : i32
    %c0_i32_1 = arith.constant 0 : i32
    return %c0_i32, %c0_i32_0 : i32, i32
  }
  func.func @transform_3(%arg0: i32) -> (i32, i32) {
    %c0_i32 = arith.constant 0 : i32
    %c0_i32_0 = arith.constant 0 : i32
    return %arg0, %c0_i32 : i32, i32
  }
}

</mosaic_0001>

<bundles_post_ra>
// kernel: tpu_custom_call.1
= control target key start
LH: loop header
LB: loop body
LE: loop exit
PB: predicated region body
PF: predicated region fallthrough
CT: control target
= control target key end

     0   :  { %8 = vsyncpa [#allocation3], 0  ;;  %s325_s0 = inlined_call_operand.hbm [shape: f32[16,32], index: 0, kind: input, shape index: {}]   ;;  %s326_s1 = inlined_call_operand.hbm [shape: f32[32,32], index: 1, kind: input, shape index: {}]   ;;  %s327_s2 = inlined_call_operand.vmem [shape: f32[1,32], index: 2, kind: input, shape index: {}]   ;;  %s328_s3 = inlined_call_operand.hbm [shape: f32[16,32], index: 3, kind: output, shape index: {}]  }
   0x1   :  { %9 = vsyncpa [#allocation6], 0 }
   0x2   :  { %10 = vsyncpa [#allocation4], 0  ;;  %s275_s12 = smov [#allocation2]  }
   0x3   :  { %s16_s13 = sshll.u32 %s275_s12, 4  ;;  %s17_s13 = int_to_ptr.vmem [resolvable:$true] %s16_s13 }
   0x4   :  { %s217_s14 = scalar_lea.vmem %s17_s13, 256  ;;  %p222_p1 = scmp.lt.s32.totalorder %s17_s13, %s17_s13 }
   0x5   :  { %p218_p0 = scmp.ne.s32.totalorder %s17_s13, %s217_s14  ;;  %p223_p2 = scmp.lt.s32.totalorder %s217_s14, %s217_s14 }
   0x7   :  { %p224_p3 = por %p223_p2, %p222_p1 }
   0x9   :  { %p225_p4 = pnand %p224_p3, %p218_p0 }
   0xb   :  { %228 = shalt.err (!%p225_p4)
}
   0xc   :  { %s276_s15 = smov 128   ;;  %s277_s16 = smov 8  }
   0xd   :  { %22 = dma.hbm_to_vmem [thread:$0]  %s325_s0, 256, %s17_s13, [#allocation3], %s276_s15, %s276_s15, %s277_s16  }
   0xe   :  { %s278_s19 = smov [#allocation5]  }
   0xf   :  { %s28_s20 = sshll.u32 %s278_s19, 4  ;;  %s29_s20 = int_to_ptr.vmem [resolvable:$true] %s28_s20 }
  0x10   :  { %s237_s21 = scalar_lea.vmem %s29_s20, 512  ;;  %p242_p6 = scmp.lt.s32.totalorder %s29_s20, %s29_s20 }
  0x11   :  { %p238_p5 = scmp.ne.s32.totalorder %s29_s20, %s237_s21  ;;  %p243_p7 = scmp.lt.s32.totalorder %s237_s21, %s237_s21 }
  0x13   :  { %p244_p8 = por %p243_p7, %p242_p6 }
  0x15   :  { %p245_p9 = pnand %p244_p8, %p238_p5 }
  0x17   :  { %248 = shalt.err (!%p245_p9)
}
  0x18   :  { %34 = dma.hbm_to_vmem [thread:$0]  %s326_s1, 512, %s29_s20, [#allocation6], %s276_s15, %s276_s15, %s277_s16  }
  0x19   :  { %269 = dma.done.wait [#allocation3], 256  }
  0x1a   :  { %270 = vsyncadd [#allocation3], 4294967040 }
  0x1b   :  { %271 = dma.done.wait [#allocation6], 512  }
  0x1c   :  { %272 = vsyncadd [#allocation6], 4294966784  ;;  %vm56_vm0 = vcmask 261120   ;;  %v48_v0 = vld [vmem:[#allocation5 + $0x18] sm:$0xff]  ;;  %v47_v1 = vld [vmem:[#allocation5 + $0x10] sm:$0xff]  ;;  %s279_s24 = smov [#allocation7]  }
  0x1d   :  { %185 = vmatprep.subr.mxu0 %v48_v0  ;;  %v43_v2 = vld [vmem:[#allocation2] sm:$0xff]  ;;  %v46_v3 = vld [vmem:[#allocation5 + $0x8] sm:$0xff]  ;;  %v45_v4 = vld [vmem:[#allocation5] sm:$0xff]  ;;  %s161_s25 = sshll.u32 %s279_s24, 4  ;;  %s162_s25 = int_to_ptr.vmem [resolvable:$true] %s161_s25 }
  0x1e   :  { %186 = vmatpush3.msra.mxu0 %v48_v0  ;;  %193 = vmatprep.mubr.msk.f32.mxu0 %vm56_vm0, %v43_v2  ;;  %v44_v5 = vld [vmem:[#allocation2 + $0x8] sm:$0xff]  ;;  %v174_v6 = vld [vmem:[%s327_s2] ss:$0 sm:$0xff]  ;;  %s249_s2 = scalar_lea.vmem %s162_s25, 256  ;;  %p254_p11 = scmp.lt.s32.totalorder %s162_s25, %s162_s25 }
  0x1f   :  { %187 = vmatprep.subr.mxu0 %v47_v1  ;;  %p250_p10 = scmp.ne.s32.totalorder %s162_s25, %s249_s2  ;;  %p255_p12 = scmp.lt.s32.totalorder %s249_s2, %s249_s2 }
  0x20   :  { %188 = vmatpush3.msra.mxu0 %v47_v1 }
  0x21   :  { %189 = vmatprep.subr.mxu0 %v46_v3  ;;  %p256_p13 = por %p255_p12, %p254_p11 }
  0x22   :  { %190 = vmatpush3.msra.mxu0 %v46_v3 }
  0x23   :  { %191 = vmatprep.subr.mxu0 %v45_v4  ;;  %p257_p0 = pnand %p256_p13, %p250_p10 }
  0x24   :  { %192 = vmatpush3.msra.mxu0 %v45_v4 }
  0x25   :  { %194 = vmatmul.mubr.msk.f32.vlgmr.msra.gmra.mxu0 %vm56_vm0, %v44_v5 }
  0xe5   :  { %v195_v7 = vpop.f32.mrf.mxu0 }
  0xe6   :  { %v135_v8 = vadd.f32 %v195_v7, %v174_v6 }
  0xe7   :  { %v129_v9 = vpop.f32.mrf.mxu0 }
  0xe8   :  { %v178_v10 = vmul.f32 -1.442695, %v135_v8  ;;  %v130_v11 = vadd.f32 %v174_v6, %v129_v9 }
  0xea   :  { %201 = vpow2.f32 %v178_v10  ;;  %v177_v12 = vmul.f32 -1.442695, %v130_v11 }
  0xec   :  { %203 = vpow2.f32 %v177_v12 }
  0xf7   :  { %v202_v13 = vpop.eup %201 }
  0xf8   :  { %v145_v14 = vadd.f32 1.0, %v202_v13 }
  0xf9   :  { %v204_v15 = vpop.eup %203 }
  0xfa   :  { %205 = vrcp.f32 %v145_v14  ;;  %v144_v16 = vadd.f32 1.0, %v204_v15 }
  0xfc   :  { %207 = vrcp.f32 %v144_v16 }
 0x107   :  { %v206_v17 = vpop.eup %205 }
 0x108   :  { %v151_v18 = vmul.f32 %v206_v17, %v135_v8 }
 0x109   :  { %v208_v19 = vpop.eup %207 }
 0x10a   :  { %v153_v20 = vadd.f32 %v151_v18, %v44_v5  ;;  %v150_v21 = vmul.f32 %v208_v19, %v130_v11 }
 0x10c   :  { %155 = vst.msk [vmem:[#allocation7 + $0x8] sm:$0xff] %vm56_vm0, %v153_v20  ;;  %v152_v22 = vadd.f32 %v150_v21, %v43_v2 }
 0x10e   :  { %154 = vst.msk [vmem:[#allocation7] sm:$0xff] %vm56_vm0, %v152_v22 }
 0x10f   :  { %260 = shalt.err (!%p257_p0)
}
 0x110   :  { %167 = dma.vmem_to_hbm [thread:$0]  %s162_s25, 256, %s328_s3, [#allocation4], %s276_s15, %s276_s15, %s277_s16  }
 0x111   :  { %273 = dma.done.wait [#allocation4], 256  }
 0x112   :  { %274 = vsyncadd [#allocation4], 4294967040 }
 0x113   :  { %171 = vsyncpa [#allocation3], 1 }
 0x114   :  { %172 = vsyncpa [#allocation6], 1 }
 0x115   :  { %173 = vsyncpa [#allocation4], 1 }

</bundles_post_ra>
